<compile_context>
chip_gen: v5e
topology: v5e:2x2
jax: 0.10.0
libtpu: 0.0.40
codegen_flags: <defaults>
</compile_context>

<pallas_src>
import jax
import jax.numpy as jnp
from jax.experimental import pallas as pl
from jax.experimental.pallas import tpu as pltpu


def _shuffle_fullrow_kernel(x_ref, o0_ref, o1_ref):
    # x_ref: (TC, 2L) block; o0/o1: (TC, L). Two straight, lane-dense copies.
    L = o0_ref.shape[-1]
    o0_ref[...] = x_ref[:, :L]
    o1_ref[...] = x_ref[:, L:]


def _shuffle_split_kernel(xe_ref, xo_ref, o0_ref, o1_ref):
    # Even / odd halves already selected by the input index_maps.
    o0_ref[...] = xe_ref[...]
    o1_ref[...] = xo_ref[...]


def _largest_divisor(n, cap, multiple):
    """Largest divisor of n that is <= cap and a multiple of `multiple` (or None)."""
    best = None
    d = 1
    while d * d <= n:
        if n % d == 0:
            for c in (d, n // d):
                if c <= cap and c % multiple == 0 and (best is None or c > best):
                    best = c
        d += 1
    return best


def _sublane_min(itemsize):
    # Minimum sublane multiple for full (8,128) vregs: 8 f32, 16 bf16, 32 int8/fp8.
    return max(8, 32 // int(itemsize))


def channel_shuffle(x, *, target_block_bytes=4 << 20):
    B, C, H, W = x.shape
    assert C % 4 == 0, "num_channels must be divisible by 4"
    Cp = C // 2
    L = H * W
    N = B * Cp
    itemsize = jnp.dtype(x.dtype).itemsize
    smin = _sublane_min(itemsize)
    row_bytes = 2 * L * itemsize

    x2 = x.reshape(N, 2 * L)                      # free, contiguous view
    out_sds = jax.ShapeDtypeStruct((N, L), x.dtype)
    bytes_accessed = 2 * x.size * itemsize        # read all of x + write both halves

    use_full_row = (row_bytes <= target_block_bytes) or (L % 128 != 0)

    if use_full_row:
        # ---- Path A: merged single input pipeline, full-row blocks (always legal). ----
        cap = max(1, target_block_bytes // row_bytes)
        if N <= cap:
            tc = N                                     # full extent: always layout-legal
        else:
            tc = (_largest_divisor(N, cap, smin)       # full (8,128)-vreg tiles
                  or _largest_divisor(N, cap, 1)       # rare fallback (padded sublanes)
                  or 1)
        grid = (N // tc,)
        in_specs = [pl.BlockSpec((tc, 2 * L), lambda n: (n, 0))]
        out_specs = (pl.BlockSpec((tc, L), lambda n: (n, 0)),
                     pl.BlockSpec((tc, L), lambda n: (n, 0)))
        kernel = _shuffle_fullrow_kernel
        operands = (x2,)
        # 1 input row-block (2L) + 2 output blocks (L each), all double-buffered.
        footprint = 2 * (tc * 2 * L + 2 * tc * L) * itemsize
        semantics = ("parallel",)
    else:
        # ---- Path B: rows too large for one block; here L % 128 == 0. ----
        # Sublane tile first (dtype-minimum multiple), then the lane tile from
        # the remaining budget in multiples of 128.
        tc = (_largest_divisor(N, smin, smin)
              or _largest_divisor(N, smin, 1)
              or 1)
        lane_cap = max(128, target_block_bytes // (tc * itemsize))
        lt = _largest_divisor(L, lane_cap, 128) or 128
        n_lane_blocks = L // lt
        grid = (N // tc, n_lane_blocks)
        even_spec = pl.BlockSpec((tc, lt), lambda n, l: (n, l))
        odd_spec = pl.BlockSpec((tc, lt), lambda n, l: (n, l + n_lane_blocks))
        o_spec = pl.BlockSpec((tc, lt), lambda n, l: (n, l))
        in_specs = [even_spec, odd_spec]
        out_specs = (o_spec, o_spec)
        kernel = _shuffle_split_kernel
        operands = (x2, x2)
        footprint = 2 * 4 * tc * lt * itemsize        # 4 refs, double-buffered
        semantics = ("parallel", "parallel")

    vmem_limit = max(int(footprint) + (4 << 20), 16 << 20)

    o0, o1 = pl.pallas_call(
        kernel,
        out_shape=(out_sds, out_sds),
        grid=grid,
        in_specs=in_specs,
        out_specs=out_specs,
        compiler_params=pltpu.CompilerParams(
            dimension_semantics=semantics,
            vmem_limit_bytes=vmem_limit,
        ),
        cost_estimate=pl.CostEstimate(
            flops=0, transcendentals=0, bytes_accessed=bytes_accessed),
    )(*operands)

    return o0.reshape(B, Cp, H, W), o1.reshape(B, Cp, H, W)


def _reference(x):
    # Literal transcription of the PyTorch forward in jnp.
    B, C, H, W = x.shape
    y = x.reshape(B * C // 2, 2, H * W)
    y = jnp.transpose(y, (1, 0, 2))
    y = y.reshape(2, -1, C // 2, H, W)
    return y[0], y[1]


if __name__ == "__main__":
    key = jax.random.PRNGKey(0)
    x = jax.random.normal(key, (2, 4, 16, 16), dtype=jnp.float32)

    o0, o1 = channel_shuffle(x)
    o0 = jax.block_until_ready(o0)
    o1 = jax.block_until_ready(o1)

    r0, r1 = _reference(x)
    assert o0.shape == r0.shape and o1.shape == r1.shape
    assert jnp.array_equal(o0, r0), "output[0] mismatch"
    assert jnp.array_equal(o1, r1), "output[1] mismatch"

    print("KERNEL_OK")
</pallas_src>

<mosaic_0001>
module attributes {stable_mosaic.version = 11 : i64} {
  func.func @_shuffle_fullrow_kernel(%arg0: i32, %arg1: memref<4x512xf32, #tpu.memory_space<vmem>>, %arg2: memref<4x256xf32, #tpu.memory_space<vmem>>, %arg3: memref<4x256xf32, #tpu.memory_space<vmem>>) attributes {dimension_semantics = [#tpu.dimension_semantics<parallel>], iteration_bounds = array<i64: 1>, scalar_prefetch = 0 : i64, scratch_operands = 0 : i64, tpu.core_type = #tpu.core_type<tc>, window_params = [{transform_indices = @transform_0, window_bounds = array<i64: 4, 512>}, {transform_indices = @transform_1, window_bounds = array<i64: 4, 256>}, {transform_indices = @transform_2, window_bounds = array<i64: 4, 256>}]} {
    %c0 = arith.constant 0 : index
    %c0_0 = arith.constant 0 : index
    %0 = vector.load %arg1[%c0, %c0_0] : memref<4x512xf32, #tpu.memory_space<vmem>>, vector<4x256xf32>
    %c0_1 = arith.constant 0 : index
    %c0_2 = arith.constant 0 : index
    %1 = vector.load %arg2[%c0_1, %c0_2] : memref<4x256xf32, #tpu.memory_space<vmem>>, vector<4x256xf32>
    tpu.vector_store %arg2[%c0_1, %c0_2], %0 {strides = array<i32>} : memref<4x256xf32, #tpu.memory_space<vmem>>, vector<4x256xf32>,
    %c0_3 = arith.constant 0 : index
    %c256 = arith.constant 256 : index
    %2 = vector.load %arg1[%c0_3, %c256] : memref<4x512xf32, #tpu.memory_space<vmem>>, vector<4x256xf32>
    %c0_4 = arith.constant 0 : index
    %c0_5 = arith.constant 0 : index
    %3 = vector.load %arg3[%c0_4, %c0_5] : memref<4x256xf32, #tpu.memory_space<vmem>>, vector<4x256xf32>
    tpu.vector_store %arg3[%c0_4, %c0_5], %2 {strides = array<i32>} : memref<4x256xf32, #tpu.memory_space<vmem>>, vector<4x256xf32>,
    return
  }
  func.func @transform_0(%arg0: i32) -> (i32, i32) {
    %c0_i32 = arith.constant 0 : i32
    %c0_i32_0 = arith.constant 0 : i32
    return %arg0, %c0_i32 : i32, i32
  }
  func.func @transform_1(%arg0: i32) -> (i32, i32) {
    %c0_i32 = arith.constant 0 : i32
    %c0_i32_0 = arith.constant 0 : i32
    return %arg0, %c0_i32 : i32, i32
  }
  func.func @transform_2(%arg0: i32) -> (i32, i32) {
    %c0_i32 = arith.constant 0 : i32
    %c0_i32_0 = arith.constant 0 : i32
    return %arg0, %c0_i32 : i32, i32
  }
}

</mosaic_0001>

<bundles_post_ra>
// kernel: tpu_custom_call.1
= control target key start
LH: loop header
LB: loop body
LE: loop exit
PB: predicated region body
PF: predicated region fallthrough
CT: control target
= control target key end

     0   :  { %8 = vsyncpa [#allocation3], 0  ;;  %s171_s0 = inlined_call_operand.hbm [shape: f32[4,512], index: 0, kind: input, shape index: {}]   ;;  %s172_s1 = inlined_call_operand.hbm [shape: f32[4,256], index: 1, kind: output, shape index: {0}]   ;;  %s173_s2 = inlined_call_operand.hbm [shape: f32[4,256], index: 2, kind: output, shape index: {1}]  }
   0x1   :  { %9 = vsyncpa [#allocation4], 0 }
   0x2   :  { %10 = vsyncpa [#allocation7], 0  ;;  %s16_s11 = sshll.u32 %s171_s0, 4  ;;  %s144_s12 = smov [#allocation2]   ;;  %s17_s11 = int_to_ptr.hbm [resolvable:$true] %s16_s11 }
   0x3   :  { %s18_s13 = sshll.u32 %s144_s12, 4  ;;  %s19_s13 = int_to_ptr.vmem [resolvable:$true] %s18_s13 }
   0x4   :  { %21 = dma.hbm_to_vmem [thread:$0]  %s17_s11, 256, %s19_s13, [#allocation3]  }
   0x5   :  { %138 = dma.done.wait [#allocation3], 256  }
   0x6   :  { %139 = vsyncadd [#allocation3], 4294967040  ;;  %s145_s14 = smov [#allocation5]   ;;  %s37_s18 = sshll.u32 %s172_s1, 4  ;;  %v26_v0 = vld [vmem:[#allocation2] sm:$0xff]  ;;  %v28_v1 = vld [vmem:[#allocation2 + $0x8] sm:$0xff]  ;;  %s38_s18 = int_to_ptr.hbm [resolvable:$true] %s37_s18 }
   0x7   :  { %s35_s15 = sshll.u32 %s145_s14, 4  ;;  %s146_s19 = smov [#allocation6]   ;;  %27 = vst [vmem:[#allocation5] sm:$0xff] %v26_v0  ;;  %s36_s15 = int_to_ptr.vmem [resolvable:$true] %s35_s15 }
   0x8   :  { %s46_s20 = sshll.u32 %s146_s19, 4  ;;  %s48_s23 = sshll.u32 %s173_s2, 4  ;;  %29 = vst [vmem:[#allocation6] sm:$0xff] %v28_v1  ;;  %s47_s20 = int_to_ptr.vmem [resolvable:$true] %s46_s20  ;;  %s49_s23 = int_to_ptr.hbm [resolvable:$true] %s48_s23 }
   0x9   :  { %40 = dma.vmem_to_hbm [thread:$0]  %s36_s15, 128, %s38_s18, [#allocation4]  }
   0xa   :  { %51 = dma.vmem_to_hbm [thread:$0]  %s47_s20, 128, %s49_s23, [#allocation7]  }
   0xb   :  { %140 = dma.done.wait [#allocation4], 128  }
   0xc   :  { %141 = vsyncadd [#allocation4], 4294967168 }
   0xd   :  { %142 = dma.done.wait [#allocation7], 128  }
   0xe   :  { %143 = vsyncadd [#allocation7], 4294967168 }
   0xf   :  { %60 = vsyncpa [#allocation3], 1 }
  0x10   :  { %61 = vsyncpa [#allocation4], 1 }
  0x11   :  { %62 = vsyncpa [#allocation7], 1 }

</bundles_post_ra>
